<compile_context>
chip_gen: v7x
topology: tpu7x:2x2x1
jax: 0.10.0
libtpu: 0.0.40
codegen_flags: <defaults>
</compile_context>

<pallas_src>
import functools

import jax
import jax.numpy as jnp
from jax.experimental import pallas as pl
from jax.experimental.pallas import tpu as pltpu


# ---------------------------------------------------------------------------
# Kernels
# ---------------------------------------------------------------------------
def _conv2d_fold_kernel(x_ref, w_ref, b_ref, o_ref, col_ref, *, H, KH, pad, bb):
    """Single-matmul conv: KH folded into the contraction (im2col along H).

    x_ref:   (bb, H, W*C_in)        bf16 lane-dense input block
    w_ref:   (KH*W*C_in, W*C_out)   bf16 banded weight (W padding + KH folded in)
    b_ref:   (1, W*C_out)           f32 bias tiled along W
    o_ref:   (bb, H, W*C_out)       f32 output block
    col_ref: (bb, H, KH*W*C_in)     bf16 im2col scratch (H-halo rows zeroed)
    """
    wc_in = x_ref.shape[-1]
    wc_out = o_ref.shape[-1]
    cdt = col_ref.dtype

    # Build the im2col columns: one static column-group store per kh, with the
    # H-direction zero halo written only on the (tiny) invalid rows.  Note: do
    # NOT gate the zero-fill behind pl.when(program_id==0) -- under "parallel"
    # semantics each TensorCore has its own scratch instance.
    for kh in range(KH):  # KH = 3: fully unrolled at trace time
        shift = kh - pad                  # output row h reads input row h+shift
        src = max(0, shift)
        dst = max(0, -shift)
        n = H - abs(shift)
        lo = kh * wc_in
        if dst > 0:
            col_ref[:, 0:dst, lo:lo + wc_in] = jnp.zeros((bb, dst, wc_in), cdt)
        if dst + n < H:
            col_ref[:, dst + n:H, lo:lo + wc_in] = jnp.zeros(
                (bb, H - dst - n, wc_in), cdt)
        col_ref[:, dst:dst + n, lo:lo + wc_in] = x_ref[:, src:src + n, :]

    # One MXU matmul: (bb*H, KH*W*C_in) @ (KH*W*C_in, W*C_out), f32 accumulate.
    lhs = col_ref[...].reshape(bb * H, KH * wc_in)
    acc = jnp.dot(lhs, w_ref[...], preferred_element_type=jnp.float32)
    acc = acc + b_ref[...]                # (1, W*C_out) f32 broadcast
    o_ref[...] = acc.reshape(bb, H, wc_out).astype(o_ref.dtype)


def _conv2d_perkh_kernel(x_ref, w_ref, b_ref, o_ref, acc_ref, *, H, KH, pad, bb):
    """KH=5/7 path: per-kh dots on statically valid H row ranges (no padded
    input copy), accumulating into an f32 scratch initialized with the bias.

    w_ref:   (KH, W*C_in, W*C_out)  bf16 banded weights
    acc_ref: (bb, H, W*C_out)       f32 accumulator scratch
    """
    wc_in = x_ref.shape[-1]
    wc_out = o_ref.shape[-1]

    acc_ref[...] = jnp.broadcast_to(b_ref[...][None], (bb, H, wc_out))
    for kh in range(KH):
        shift = kh - pad
        src = max(0, shift)
        dst = max(0, -shift)
        n = H - abs(shift)
        lhs = x_ref[:, src:src + n, :].reshape(bb * n, wc_in)
        out = jnp.dot(lhs, w_ref[kh], preferred_element_type=jnp.float32)
        acc_ref[:, dst:dst + n, :] += out.reshape(bb, n, wc_out)
    o_ref[...] = acc_ref[...].astype(o_ref.dtype)


# ---------------------------------------------------------------------------
# Hardware-aware sizing helpers
# ---------------------------------------------------------------------------
def _tpu_budget():
    """Returns (tensorcores_per_chip, vmem accounting budget, vmem limit)."""
    cores, phys = 1, 64 * 1024 * 1024          # conservative fallback
    try:
        kind = jax.devices()[0].device_kind.lower()
        if "v7" in kind:
            cores, phys = 2, 64 * 1024 * 1024   # 2 TCs, 64 MiB VMEM per core
        elif "v2" in kind or "v3" in kind:
            cores, phys = 1, 16 * 1024 * 1024
        elif "v4" in kind or "v5" in kind or "v6" in kind:
            cores, phys = 1, 128 * 1024 * 1024
    except Exception:
        pass
    try:
        info = pltpu.get_tpu_info()
        v = int(getattr(info, "vmem_capacity_bytes", 0))
        if v >= 16 * 1024 * 1024:
            phys = min(phys, v)
    except Exception:
        pass
    return cores, int(phys * 0.70), int(phys * 0.75)


def _pick_block_batch(B, H, WC_in, WC_out, KH, fold, budget_bytes, min_steps):
    """Images per grid step, from a real VMEM budget: 2x bf16 input blocks,
    2x f32 output blocks, the (double-buffered) band, plus kernel scratch."""
    in_b = H * WC_in * 2                    # bf16 input block
    out_b = H * WC_out * 4                  # f32 output block
    scr_b = H * KH * WC_in * 2 if fold else H * WC_out * 4
    per_image = 2 * in_b + 2 * out_b + scr_b
    fixed = 2 * (KH * WC_in * WC_out * 2) + 2 * (WC_out * 4)
    avail = max(budget_bytes - fixed, per_image)
    cap = B if min_steps <= 1 else max(1, B // min_steps)
    cap = max(1, min(cap, avail // per_image))
    for bb in range(cap, 0, -1):
        if B % bb == 0:
            return bb
    return 1


def _make_banded_weight(weight_oihw, W, padding, compute_dtype):
    """(C_out, C_in, KH, KW) torch weights -> (KH, W*C_in, W*C_out) band.

    band[kh, xi*C_in+ci, xo*C_out+co] = w[co, ci, kh, xi - xo + padding]
    (zero when the tap falls outside the kernel, so the W-direction 'same'
    zero padding is handled by the band structure).
    """
    C_out, C_in, KH, KW = weight_oihw.shape
    w_t = jnp.transpose(weight_oihw, (2, 3, 1, 0))  # (KH, KW, C_in, C_out)
    xi = jnp.arange(W)[:, None]                     # input column
    xo = jnp.arange(W)[None, :]                     # output column
    kw = xi - xo + padding                          # kernel tap connecting xi -> xo
    valid = (kw >= 0) & (kw < KW)
    kw_c = jnp.clip(kw, 0, KW - 1)
    band = w_t[:, kw_c, :, :]                       # (KH, W, W, C_in, C_out)
    band = jnp.where(valid[None, :, :, None, None], band, 0.0)
    band = jnp.transpose(band, (0, 1, 3, 2, 4))     # (KH, xi, C_in, xo, C_out)
    return band.reshape(KH, W * C_in, W * C_out).astype(compute_dtype)


# ---------------------------------------------------------------------------
# Wrapper
# ---------------------------------------------------------------------------
@functools.partial(jax.jit, static_argnames=("kernel_size", "padding"))
def _conv2d_same(x_nchw, band, bias_row, *, kernel_size, padding):
    """Shared-weight 'same' conv over a stacked batch, one pallas_call."""
    B, C_in, H, W = x_nchw.shape
    KH = kernel_size
    assert padding == kernel_size // 2       # module enforces 'same' padding
    WC_in = W * C_in
    WC_out = band.shape[-1]
    C_out = WC_out // W
    fold = (KH == 3)                          # fold KH into K for 3x3 kernels
    compute_dtype = band.dtype

    # NCHW -> lane-dense bf16 (B, H, W*C_in); cast fuses with the transpose.
    x = jnp.transpose(x_nchw, (0, 2, 3, 1)).reshape(B, H, WC_in).astype(compute_dtype)

    cores, budget, vmem_limit = _tpu_budget()
    min_steps = 2 if (cores >= 2 and B >= 2) else 1   # only v7x needs >=2 steps
    bb = _pick_block_batch(B, H, WC_in, WC_out, KH, fold, budget, min_steps)
    grid = (B // bb,)

    if fold:
        w = band.reshape(KH * WC_in, WC_out)
        w_spec = pl.BlockSpec((KH * WC_in, WC_out), lambda i: (0, 0))
        scratch = [pltpu.VMEM((bb, H, KH * WC_in), compute_dtype)]
        kernel = functools.partial(_conv2d_fold_kernel, H=H, KH=KH, pad=padding, bb=bb)
    else:
        w = band
        w_spec = pl.BlockSpec((KH, WC_in, WC_out), lambda i: (0, 0, 0))
        scratch = [pltpu.VMEM((bb, H, WC_out), jnp.float32)]
        kernel = functools.partial(_conv2d_perkh_kernel, H=H, KH=KH, pad=padding, bb=bb)

    # TODO(synk): for large W the dense band is O(W^2*C_in*C_out); tile W in
    # the grid (per-tile band with W halo) before it stops fitting VMEM.
    out = pl.pallas_call(
        kernel,
        # f32 output to match the PyTorch module; emit bf16 here if the
        # downstream consumer tolerates it (halves the largest HBM stream).
        out_shape=jax.ShapeDtypeStruct((B, H, WC_out), jnp.float32),
        grid_spec=pltpu.PrefetchScalarGridSpec(
            num_scalar_prefetch=0,
            grid=grid,
            in_specs=[
                pl.BlockSpec((bb, H, WC_in), lambda i: (i, 0, 0)),
                w_spec,                               # constant index -> DMA'd once
                pl.BlockSpec((1, WC_out), lambda i: (0, 0)),
            ],
            out_specs=pl.BlockSpec((bb, H, WC_out), lambda i: (i, 0, 0)),
            scratch_shapes=scratch,
        ),
        compiler_params=pltpu.CompilerParams(
            dimension_semantics=("parallel",),
            vmem_limit_bytes=vmem_limit),
    )(x, w, bias_row)

    # (B, H, W*C_out) -> NCHW to match the PyTorch interface.
    out = out.reshape(B, H, W, C_out)
    return jnp.transpose(out, (0, 3, 1, 2)).astype(x_nchw.dtype)


# ---------------------------------------------------------------------------
# Module
# ---------------------------------------------------------------------------
class MultiblockConvPallas:
    """Pallas equivalent of MultiblockConv(dims=2) with zero boundary padding."""

    def __init__(self, in_channels, out_channels, kernel_size, padding, key,
                 compute_dtype=jnp.bfloat16):
        if kernel_size not in (3, 5, 7):
            raise NotImplementedError("kernel_size must be 3, 5, or 7.")
        if padding != kernel_size // 2:
            raise NotImplementedError("padding must be kernel_size // 2 ('same').")
        kw_, kb_ = jax.random.split(key)
        fan_in = in_channels * kernel_size * kernel_size
        bound = 1.0 / (fan_in ** 0.5)
        # PyTorch Conv2d parameter layout (C_out, C_in, KH, KW).
        self.weight = jax.random.uniform(
            kw_, (out_channels, in_channels, kernel_size, kernel_size),
            minval=-bound, maxval=bound, dtype=jnp.float32)
        self.bias = jax.random.uniform(
            kb_, (out_channels,), minval=-bound, maxval=bound, dtype=jnp.float32)
        self.in_channels = in_channels
        self.out_channels = out_channels
        self.kernel_size = kernel_size
        self.padding = padding
        self.compute_dtype = compute_dtype
        # Cache keyed on (W, weight identity, bias identity) so updated
        # parameters never silently reuse a stale packed band.
        self._param_cache = {}

    def _packed_params(self, W):
        key = (W, id(self.weight), id(self.bias))
        if key not in self._param_cache:
            band = _make_banded_weight(self.weight, W, self.padding, self.compute_dtype)
            brow = jnp.tile(self.bias, W).reshape(1, W * self.out_channels).astype(jnp.float32)
            self._param_cache = {key: (band, brow)}   # keep only the live params
        return self._param_cache[key]

    def __call__(self, tensor_list, domain=None):
        # TODO(synk): cross-block ('INPUT') neighbor padding needs the PISOtorch
        # domain connectivity graph; only isolated-block / ZERO boundary padding
        # is implemented here.
        shapes = {tuple(t.shape) for t in tensor_list}
        if len(shapes) == 1:
            # Fast path: stack the whole list + batch into one leading axis and
            # run a single pallas_call for everything.
            L = len(tensor_list)
            x = jnp.stack(tensor_list, axis=0)               # (L, N, C, H, W)
            N = x.shape[1]
            xb = x.reshape((L * N,) + x.shape[2:])
            band, brow = self._packed_params(x.shape[-1])
            out = _conv2d_same(xb, band, brow,
                               kernel_size=self.kernel_size, padding=self.padding)
            out = out.reshape((L, N) + out.shape[1:])
            return [out[i] for i in range(L)]
        # Fallback: blocks with different spatial shapes.
        outs = []
        for t in tensor_list:
            band, brow = self._packed_params(t.shape[-1])
            outs.append(_conv2d_same(t, band, brow,
                                     kernel_size=self.kernel_size, padding=self.padding))
        return outs


# ---------------------------------------------------------------------------
# Reference + test
# ---------------------------------------------------------------------------
def _reference_conv2d(x, weight, bias, padding):
    out = jax.lax.conv_general_dilated(
        x, weight, window_strides=(1, 1),
        padding=[(padding, padding), (padding, padding)],
        dimension_numbers=("NCHW", "OIHW", "NCHW"))
    return out + bias.reshape(1, -1, 1, 1)


if __name__ == "__main__":
    key = jax.random.PRNGKey(0)
    k_mod, k_x0, k_x1 = jax.random.split(key, 3)

    # Module config: shared Conv2d(in=4, out=8, kernel_size=3, padding='same').
    module = MultiblockConvPallas(
        in_channels=4, out_channels=8, kernel_size=3, padding=1, key=k_mod)

    # Multiblock input: a list of NCHW tensors sharing the conv layer.
    x0 = jax.random.normal(k_x0, (2, 4, 16, 16), dtype=jnp.float32)
    x1 = jax.random.normal(k_x1, (2, 4, 16, 16), dtype=jnp.float32)
    tensor_list = [x0, x1]

    outs = module(tensor_list)
    outs = [jax.block_until_ready(o) for o in outs]

    # Verify against the pure-JAX f32 reference conv (bf16 MXU operands ->
    # loose-ish but honest tolerance).
    ok = True
    for x, o in zip(tensor_list, outs):
        ref = _reference_conv2d(x, module.weight, module.bias, padding=module.padding)
        ok = ok and bool(jnp.allclose(o, ref, atol=1e-2, rtol=1e-2))

    if ok:
        print("KERNEL_OK")
    else:
        print("KERNEL_MISMATCH")
</pallas_src>

<mosaic_0001>
module attributes {stable_mosaic.version = 11 : i64} {
  func.func @_conv2d_fold_kernel(%arg0: i32, %arg1: memref<4x16x64xbf16, #tpu.memory_space<vmem>>, %arg2: memref<192x128xbf16, #tpu.memory_space<vmem>>, %arg3: memref<1x128xf32, #tpu.memory_space<vmem>>, %arg4: memref<4x16x128xf32, #tpu.memory_space<vmem>>, %arg5: memref<4x16x192xbf16, #tpu.memory_space<vmem>>) attributes {dimension_semantics = [#tpu.dimension_semantics<parallel>], iteration_bounds = array<i64: 1>, scalar_prefetch = 0 : i64, scratch_operands = 1 : i64, tpu.core_type = #tpu.core_type<tc>, window_params = [{transform_indices = @transform_0, window_bounds = array<i64: 4, 16, 64>}, {pipeline_mode = #tpu.pipeline_mode<synchronous>, transform_indices = @transform_1, window_bounds = array<i64: 192, 128>}, {pipeline_mode = #tpu.pipeline_mode<synchronous>, transform_indices = @transform_2, window_bounds = array<i64: 1, 128>}, {transform_indices = @transform_3, window_bounds = array<i64: 4, 16, 128>}]} {
    %cst = arith.constant 0.000000e+00 : bf16
    %0 = vector.broadcast %cst : bf16 to vector<4x1x64xbf16>
    %c0 = arith.constant 0 : index
    %c0_0 = arith.constant 0 : index
    %c0_1 = arith.constant 0 : index
    %1 = vector.load %arg5[%c0, %c0_0, %c0_1] : memref<4x16x192xbf16, #tpu.memory_space<vmem>>, vector<4x1x64xbf16>
    tpu.vector_store %arg5[%c0, %c0_0, %c0_1], %0 {strides = array<i32>} : memref<4x16x192xbf16, #tpu.memory_space<vmem>>, vector<4x1x64xbf16>,
    %c0_2 = arith.constant 0 : index
    %c0_3 = arith.constant 0 : index
    %c0_4 = arith.constant 0 : index
    %2 = vector.load %arg1[%c0_2, %c0_3, %c0_4] : memref<4x16x64xbf16, #tpu.memory_space<vmem>>, vector<4x15x64xbf16>
    %c0_5 = arith.constant 0 : index
    %c1 = arith.constant 1 : index
    %c0_6 = arith.constant 0 : index
    %3 = vector.load %arg5[%c0_5, %c1, %c0_6] : memref<4x16x192xbf16, #tpu.memory_space<vmem>>, vector<4x15x64xbf16>
    tpu.vector_store %arg5[%c0_5, %c1, %c0_6], %2 {strides = array<i32>} : memref<4x16x192xbf16, #tpu.memory_space<vmem>>, vector<4x15x64xbf16>,
    %c0_7 = arith.constant 0 : index
    %c0_8 = arith.constant 0 : index
    %c0_9 = arith.constant 0 : index
    %4 = vector.load %arg1[%c0_7, %c0_8, %c0_9] : memref<4x16x64xbf16, #tpu.memory_space<vmem>>, vector<4x16x64xbf16>
    %c0_10 = arith.constant 0 : index
    %c0_11 = arith.constant 0 : index
    %c64 = arith.constant 64 : index
    %5 = vector.load %arg5[%c0_10, %c0_11, %c64] : memref<4x16x192xbf16, #tpu.memory_space<vmem>>, vector<4x16x64xbf16>
    tpu.vector_store %arg5[%c0_10, %c0_11, %c64], %4 {strides = array<i32>} : memref<4x16x192xbf16, #tpu.memory_space<vmem>>, vector<4x16x64xbf16>,
    %cst_12 = arith.constant 0.000000e+00 : bf16
    %6 = vector.broadcast %cst_12 : bf16 to vector<4x1x64xbf16>
    %c0_13 = arith.constant 0 : index
    %c15 = arith.constant 15 : index
    %c128 = arith.constant 128 : index
    %7 = vector.load %arg5[%c0_13, %c15, %c128] : memref<4x16x192xbf16, #tpu.memory_space<vmem>>, vector<4x1x64xbf16>
    tpu.vector_store %arg5[%c0_13, %c15, %c128], %6 {strides = array<i32>} : memref<4x16x192xbf16, #tpu.memory_space<vmem>>, vector<4x1x64xbf16>,
    %c0_14 = arith.constant 0 : index
    %c1_15 = arith.constant 1 : index
    %c0_16 = arith.constant 0 : index
    %8 = vector.load %arg1[%c0_14, %c1_15, %c0_16] : memref<4x16x64xbf16, #tpu.memory_space<vmem>>, vector<4x15x64xbf16>
    %c0_17 = arith.constant 0 : index
    %c0_18 = arith.constant 0 : index
    %c128_19 = arith.constant 128 : index
    %9 = vector.load %arg5[%c0_17, %c0_18, %c128_19] : memref<4x16x192xbf16, #tpu.memory_space<vmem>>, vector<4x15x64xbf16>
    tpu.vector_store %arg5[%c0_17, %c0_18, %c128_19], %8 {strides = array<i32>} : memref<4x16x192xbf16, #tpu.memory_space<vmem>>, vector<4x15x64xbf16>,
    %c0_20 = arith.constant 0 : index
    %c0_21 = arith.constant 0 : index
    %c0_22 = arith.constant 0 : index
    %10 = vector.load %arg5[%c0_20, %c0_21, %c0_22] : memref<4x16x192xbf16, #tpu.memory_space<vmem>>, vector<4x16x192xbf16>
    %11 = vector.shape_cast %10 : vector<4x16x192xbf16> to vector<64x192xbf16>
    %c0_23 = arith.constant 0 : index
    %c0_24 = arith.constant 0 : index
    %12 = vector.load %arg2[%c0_23, %c0_24] : memref<192x128xbf16, #tpu.memory_space<vmem>>, vector<192x128xbf16>
    %cst_25 = arith.constant dense<0.000000e+00> : vector<64x128xf32>
    %13 = tpu.matmul %11, %12, %cst_25 {dimension_numbers = #tpu.dot_dimension_numbers<[1], [0], [0], [1], [0, 0, 1, 1], [], []>} : vector<64x192xbf16>, vector<192x128xbf16>, vector<64x128xf32> -> vector<64x128xf32>
    %c0_26 = arith.constant 0 : index
    %c0_27 = arith.constant 0 : index
    %14 = vector.load %arg3[%c0_26, %c0_27] : memref<1x128xf32, #tpu.memory_space<vmem>>, vector<1x128xf32>
    %15 = vector.broadcast %14 : vector<1x128xf32> to vector<64x128xf32>
    %16 = arith.addf %13, %15 : vector<64x128xf32>
    %17 = vector.shape_cast %16 : vector<64x128xf32> to vector<4x16x128xf32>
    %c0_28 = arith.constant 0 : index
    %c0_29 = arith.constant 0 : index
    %c0_30 = arith.constant 0 : index
    %18 = vector.load %arg4[%c0_28, %c0_29, %c0_30] : memref<4x16x128xf32, #tpu.memory_space<vmem>>, vector<4x16x128xf32>
    tpu.vector_store %arg4[%c0_28, %c0_29, %c0_30], %17 {strides = array<i32>} : memref<4x16x128xf32, #tpu.memory_space<vmem>>, vector<4x16x128xf32>,
    return
  }
  func.func @transform_0(%arg0: i32) -> (i32, i32, i32) {
    %c0_i32 = arith.constant 0 : i32
    %c0_i32_0 = arith.constant 0 : i32
    %c0_i32_1 = arith.constant 0 : i32
    return %arg0, %c0_i32, %c0_i32_0 : i32, i32, i32
  }
  func.func @transform_1(%arg0: i32) -> (i32, i32) {
    %c0_i32 = arith.constant 0 : i32
    %c0_i32_0 = arith.constant 0 : i32
    %c0_i32_1 = arith.constant 0 : i32
    return %c0_i32, %c0_i32_0 : i32, i32
  }
  func.func @transform_2(%arg0: i32) -> (i32, i32) {
    %c0_i32 = arith.constant 0 : i32
    %c0_i32_0 = arith.constant 0 : i32
    %c0_i32_1 = arith.constant 0 : i32
    return %c0_i32, %c0_i32_0 : i32, i32
  }
  func.func @transform_3(%arg0: i32) -> (i32, i32, i32) {
    %c0_i32 = arith.constant 0 : i32
    %c0_i32_0 = arith.constant 0 : i32
    %c0_i32_1 = arith.constant 0 : i32
    return %arg0, %c0_i32, %c0_i32_0 : i32, i32, i32
  }
}

</mosaic_0001>

<bundles_post_ra>
// kernel: _conv2d_same.1
= control target key start
LH: loop header
LB: loop body
LE: loop exit
PB: predicated region body
PF: predicated region fallthrough
CT: control target
= control target key end

     0   :  { %v519_v1 = vmov 0   ;;  %s520_s16 = smov 64   ;;  %vm15_vm0 = vcmask 516096   ;;  %vm16_vm1 = vsmask.f32 256  ;;  %vm150_vm2 = vcmask 523271   ;;  %s717_s0 = inlined_call_operand.vmem [shape: bf16[4,16,64], index: 0, kind: input, shape index: {}]   ;;  %s718_s1 = inlined_call_operand.vmem [shape: bf16[192,128], index: 1, kind: input, shape index: {}]   ;;  %s719_s2 = inlined_call_operand.vmem [shape: f32[1,128], index: 2, kind: input, shape index: {}]   ;;  %s720_s3 = inlined_call_operand.vmem [shape: f32[4,16,128], index: 3, kind: output, shape index: {}]  }
   0x1   :  { %v495_v0 = vld [vmem:[%s717_s0] sm:$0xff]   ;;  %363 = vmatprep.subr.bf16.mxu0 %v519_v1  ;;  %469 = vmatprep.subr.bf16.mxu1 %v519_v1  ;;  %v496_v2 = vld [vmem:[%s717_s0 + $0x10] sm:$0xff]   ;;  %v497_v3 = vld [vmem:[%s717_s0 + $0x8] sm:$0xff]   ;;  %vm151_vm4 = vsmask.f32 7966  ;;  %vm90_vm5 = vcmask 523264  }
   0x2   :  { %133 = vrot.lane.b32.xlu0 %v495_v0, %s520_s16  ;;  %v498_v4 = vld [vmem:[%s717_s0 + $0x18] sm:$0xff]   ;;  %135 = vrot.lane.b32.xlu1 %v497_v3, %s520_s16  ;;  %v499_v5 = vld [vmem:[%s718_s1] sm:$0xff]   ;;  %vm571_vm3 = vmand %vm15_vm0, %vm16_vm1  ;;  %vm91_vm7 = vsmask.f32 7938  ;;  %vm225_vm8 = vsmask.f32 7424 }
   0x3   :  { %364 = vmatpush1.bf16.msra.mxu0 %v499_v5  ;;  %v500_v6 = vld [vmem:[%s718_s1 + $0x8] sm:$0xff]   ;;  %481 = vmatpush1.bf16.msra.mxu1 %v499_v5  ;;  %v501_v7 = vld [vmem:[%s718_s1 + $0x10] sm:$0xff]   ;;  %v502_v8 = vld [vmem:[%s718_s1 + $0x18] sm:$0xff]   ;;  %vm145_vm11 = vcmask 1048064  }
   0x4   :  { %365 = vmatprep.subr.bf16.mxu0 %v519_v1  ;;  %470 = vmatprep.subr.bf16.mxu1 %v519_v1  ;;  %v18_v10 = vld [vmem:[#allocation2] sm:$0x1]  ;;  %v153_v12 = vld [vmem:[#allocation2 + $0x8] sm:$0x80]  ;;  %v156_v13 = vld [vmem:[#allocation2 + $0x18] sm:$0x80] }
   0x5   :  { %v19_v11 = vsel %vm571_vm3, 0, %v18_v10  ;;  %v503_v14 = vld [vmem:[%s718_s1 + $0x20] sm:$0xff]   ;;  %vm152_vm6 = vmand %vm150_vm2, %vm151_vm4  ;;  %v159_v15 = vld [vmem:[#allocation2 + $0x28] sm:$0x80] }
   0x6   :  { %137 = vrot.lane.b32.xlu0 %v496_v2, %s520_s16  ;;  %139 = vrot.lane.b32.xlu1 %v498_v4, %s520_s16  ;;  %20 = vst [vmem:[#allocation2] sm:$0x1] %v19_v11  ;;  %v162_v16 = vld [vmem:[#allocation2 + $0x38] sm:$0x80]  ;;  %v154_v17 = vsel %vm152_vm6, 0, %v153_v12  ;;  %v157_v18 = vsel %vm152_vm6, 0, %v156_v13  ;;  %vm610_vm9 = vmand %vm90_vm5, %vm225_vm8 }
   0x7   :  { %366 = vmatpush1.bf16.msra.mxu0 %v500_v6  ;;  %482 = vmatpush1.bf16.msra.mxu1 %v500_v6  ;;  %v160_v19 = vsel %vm152_vm6, 0, %v159_v15  ;;  %v163_v20 = vsel %vm152_vm6, 0, %v162_v16  ;;  %155 = vst [vmem:[#allocation2 + $0x8] sm:$0x80] %v154_v17  ;;  %158 = vst [vmem:[#allocation2 + $0x18] sm:$0x80] %v157_v18 }
   0x8   :  { %367 = vmatprep.subr.bf16.mxu0 %v519_v1  ;;  %471 = vmatprep.subr.bf16.mxu1 %v519_v1  ;;  %161 = vst [vmem:[#allocation2 + $0x28] sm:$0x80] %v160_v19  ;;  %164 = vst [vmem:[#allocation2 + $0x38] sm:$0x80] %v163_v20  ;;  %v504_v21 = vld [vmem:[%s718_s1 + $0x28] sm:$0xff]   ;;  %v509_v22 = vld [vmem:[%s717_s0] sm:$0xff]  }
   0x9   :  { %v510_v23 = vld [vmem:[%s717_s0 + $0x8] sm:$0xff]   ;;  %v511_v24 = vld [vmem:[%s717_s0 + $0x10] sm:$0xff]   ;;  %v512_v25 = vld [vmem:[%s717_s0 + $0x18] sm:$0xff]   ;;  %v194_v26 = vshrl.u32 %v509_v22, 16  ;;  %v196_v27 = vshll.u32 %v509_v22, 16 }
   0xa   :  { %v201_v28 = vshrl.u32 %v510_v23, 16  ;;  %v203_v29 = vshll.u32 %v510_v23, 16  ;;  %v208_v30 = vshrl.u32 %v511_v24, 16  ;;  %v210_v31 = vshll.u32 %v511_v24, 16  ;;  %v513_v34 = vld [vmem:[%s717_s0] sm:$0xff]   ;;  %v505_v35 = vld [vmem:[%s718_s1 + $0x30] sm:$0xff]   ;;  %vm617_vm10 = vmand %vm90_vm5, %vm91_vm7 }
   0xb   :  { %368 = vmatpush1.bf16.msra.mxu0 %v501_v7  ;;  %483 = vmatpush1.bf16.msra.mxu1 %v501_v7  ;;  %v215_v32 = vshrl.u32 %v512_v25, 16  ;;  %v217_v33 = vshll.u32 %v512_v25, 16  ;;  %v198_v36 = vrot.slane %v196_v27, 1  ;;  %v59_v43 = vshrl.u32 %v513_v34, 16  ;;  %v24_v50 = vld [vmem:[#allocation2 + $0x20] sm:$0x1] }
   0xc   :  { %369 = vmatprep.subr.bf16.mxu0 %v519_v1  ;;  %472 = vmatprep.subr.bf16.mxu1 %v519_v1  ;;  %v205_v37 = vrot.slane %v203_v29, 1  ;;  %v212_v38 = vrot.slane %v210_v31, 1  ;;  %v62_v49 = vshll.u32 %v513_v34, 16  ;;  %v25_v55 = vsel %vm571_vm3, 0, %v24_v50  ;;  %v515_v58 = vld [vmem:[%s717_s0 + $0x10] sm:$0xff]   ;;  %v506_v59 = vld [vmem:[%s718_s1 + $0x38] sm:$0xff]  }
   0xd   :  { %v219_v39 = vrot.slane %v217_v33, 1  ;;  %v93_v44 = vld [vmem:[#allocation2] sm:$0xff]  ;;  %v199_v45 = vor.u32 %v198_v36, %v194_v26  ;;  %v61_v54 = vrot.slane %v59_v43, 7  ;;  %26 = vst [vmem:[#allocation2 + $0x20] sm:$0x1] %v25_v55  ;;  %v73_v0 = vshrl.u32 %v515_v58, 16 }
   0xe   :  { %v227_v41 = vld [vmem:[#allocation2 + $0x8] sm:$0xff]  ;;  %v230_v42 = vld [vmem:[#allocation2 + $0x18] sm:$0xff]  ;;  %v206_v46 = vor.u32 %v205_v37, %v201_v28  ;;  %v213_v52 = vor.u32 %v212_v38, %v208_v30  ;;  %v21_v63 = vld [vmem:[#allocation2 + $0x10] sm:$0x1]  ;;  %v76_v2 = vshll.u32 %v515_v58, 16 }
   0xf   :  { %370 = vmatpush1.bf16.msra.mxu0 %v502_v8  ;;  %484 = vmatpush1.bf16.msra.mxu1 %v502_v8  ;;  %v233_v47 = vld [vmem:[#allocation2 + $0x28] sm:$0xff]  ;;  %v236_v48 = vld [vmem:[#allocation2 + $0x38] sm:$0xff]  ;;  %v220_v53 = vor.u32 %v219_v39, %v215_v32  ;;  %v228_v56 = vsel %vm610_vm9, %v199_v45, %v227_v41  ;;  %v64_v62 = vor.u32 %v62_v49, %v61_v54  ;;  %v22_v3 = vsel %vm571_vm3, 0, %v21_v63  ;;  %v27_v6 = vld [vmem:[#allocation2 + $0x30] sm:$0x1] }
  0x10   :  { %371 = vmatprep.subr.bf16.mxu0 %v519_v1  ;;  %473 = vmatprep.subr.bf16.mxu1 %v519_v1  ;;  %v628_v57 = vsel %vm610_vm9, %v206_v46, %v230_v42  ;;  %v234_v60 = vsel %vm610_vm9, %v213_v52, %v233_v47  ;;  %229 = vst [vmem:[#allocation2 + $0x8] sm:$0xff] %v228_v56  ;;  %v517_v4 = vld [vmem:[%s717_s0 + $0x8] sm:$0xff]   ;;  %23 = vst [vmem:[#allocation2 + $0x10] sm:$0x1] %v22_v3  ;;  %v75_v7 = vrot.slane %v73_v0, 7  ;;  %v518_v12 = vld [vmem:[%s717_s0 + $0x18] sm:$0xff]  }
  0x11   :  { %v640_v61 = vsel %vm610_vm9, %v220_v53, %v236_v48  ;;  %232 = vst [vmem:[#allocation2 + $0x18] sm:$0xff] %v628_v57  ;;  %465 = vmatprep.mubr.msk.bf16.mxu0 %vm90_vm5, %v228_v56  ;;  %235 = vst [vmem:[#allocation2 + $0x28] sm:$0xff] %v234_v60  ;;  %467 = vmatprep.mubr.msk.bf16.mxu1 %vm90_vm5, %v234_v60  ;;  %v94_v5 = vsel %vm617_vm10, %v64_v62, %v93_v44  ;;  %v66_v8 = vshrl.u32 %v517_v4, 16  ;;  %v507_v13 = vld [vmem:[%s718_s1 + $0x40] sm:$0xff]   ;;  %v514_v27 = vld [vmem:[%s718_s1 + $0x50] sm:$0xff]  }
  0x12   :  { %238 = vst [vmem:[#allocation2 + $0x38] sm:$0xff] %v640_v61  ;;  %95 = vst [vmem:[#allocation2] sm:$0xff] %v94_v5  ;;  %v69_v10 = vshll.u32 %v517_v4, 16  ;;  %v28_v11 = vsel %vm571_vm3, 0, %v27_v6  ;;  %v80_v16 = vshrl.u32 %v518_v12, 16  ;;  %v83_v17 = vshll.u32 %v518_v12, 16 }
  0x13   :  { %372 = vmatpush1.bf16.msra.mxu0 %v503_v14  ;;  %485 = vmatpush1.bf16.msra.mxu1 %v503_v14  ;;  %29 = vst [vmem:[#allocation2 + $0x30] sm:$0x1] %v28_v11  ;;  %v78_v14 = vor.u32 %v76_v2, %v75_v7  ;;  %v68_v15 = vrot.slane %v66_v8, 7  ;;  %v516_v28 = vld [vmem:[%s718_s1 + $0x58] sm:$0xff]   ;;  %v452_v36 = vld [vmem:[%s719_s2] ss:$0 sm:$0xff] }
  0x14   :  { %373 = vmatprep.subr.bf16.mxu0 %v519_v1  ;;  %474 = vmatprep.subr.bf16.mxu1 %v519_v1  ;;  %v99_v18 = vld [vmem:[#allocation2 + $0x20] sm:$0xff]  ;;  %v82_v20 = vrot.slane %v80_v16, 7 }
  0x15   :  { %v100_v9 = vsel %vm617_vm10, %v78_v14, %v99_v18  ;;  %v71_v19 = vor.u32 %v69_v10, %v68_v15 }
  0x16   :  { %101 = vst [vmem:[#allocation2 + $0x20] sm:$0xff] %v100_v9  ;;  %v85_v23 = vor.u32 %v83_v17, %v82_v20 }
  0x17   :  { %374 = vmatpush1.bf16.msra.mxu0 %v504_v21  ;;  %486 = vmatpush1.bf16.msra.mxu1 %v504_v21  ;;  %v508_v21 = vld [vmem:[%s718_s1 + $0x48] sm:$0xff]   ;;  %v96_v22 = vld [vmem:[#allocation2 + $0x10] sm:$0xff] }
  0x18   :  { %375 = vmatprep.subr.bf16.mxu0 %v519_v1  ;;  %475 = vmatprep.subr.bf16.mxu1 %v519_v1  ;;  %v97_v24 = vsel %vm617_vm10, %v71_v19, %v96_v22 }
  0x19   :  { %98 = vst [vmem:[#allocation2 + $0x10] sm:$0xff] %v97_v24 }
  0x1a   :  { %v102_v25 = vld [vmem:[#allocation2 + $0x30] sm:$0xff] }
  0x1b   :  { %376 = vmatpush1.bf16.msra.mxu0 %v505_v35  ;;  %487 = vmatpush1.bf16.msra.mxu1 %v505_v35  ;;  %v103_v26 = vsel %vm617_vm10, %v85_v23, %v102_v25 }
  0x1c   :  { %377 = vmatprep.subr.bf16.mxu0 %v519_v1  ;;  %476 = vmatprep.subr.bf16.mxu1 %v519_v1  ;;  %104 = vst [vmem:[#allocation2 + $0x30] sm:$0xff] %v103_v26 }
  0x1f   :  { %378 = vmatpush1.bf16.msra.mxu0 %v506_v59  ;;  %488 = vmatpush1.bf16.msra.mxu1 %v506_v59 }
  0x20   :  { %379 = vmatprep.subr.bf16.mxu0 %v519_v1  ;;  %477 = vmatprep.subr.bf16.mxu1 %v519_v1 }
  0x23   :  { %380 = vmatpush1.bf16.msra.mxu0 %v507_v13  ;;  %489 = vmatpush1.bf16.msra.mxu1 %v507_v13 }
  0x24   :  { %381 = vmatprep.subr.bf16.mxu0 %v519_v1  ;;  %478 = vmatprep.subr.bf16.mxu1 %v519_v1 }
  0x27   :  { %382 = vmatpush1.bf16.msra.mxu0 %v508_v21  ;;  %490 = vmatpush1.bf16.msra.mxu1 %v508_v21 }
  0x28   :  { %383 = vmatprep.subr.bf16.mxu0 %v519_v1  ;;  %479 = vmatprep.subr.bf16.mxu1 %v519_v1 }
  0x2b   :  { %384 = vmatpush1.bf16.msra.mxu0 %v514_v27  ;;  %491 = vmatpush1.bf16.msra.mxu1 %v514_v27 }
  0x2c   :  { %385 = vmatprep.subr.bf16.mxu0 %v519_v1  ;;  %480 = vmatprep.subr.bf16.mxu1 %v519_v1 }
  0x2f   :  { %386 = vmatpush1.bf16.msra.mxu0 %v516_v28  ;;  %492 = vmatpush1.bf16.msra.mxu1 %v516_v28 }
  0x74   :  { %v134_v29 = vpop.permute.xlu0 %133  ;;  %v136_v30 = vpop.permute.xlu1 %135 }
  0x75   :  { %146 = vst.msk [vmem:[#allocation2] sm:$0xff] %vm145_vm11, %v134_v29  ;;  %147 = vst.msk [vmem:[#allocation2 + $0x10] sm:$0xff] %vm145_vm11, %v136_v30 }
  0x78   :  { %v138_v31 = vpop.permute.xlu0 %137  ;;  %v140_v32 = vpop.permute.xlu1 %139 }
  0x79   :  { %148 = vst.msk [vmem:[#allocation2 + $0x20] sm:$0xff] %vm145_vm11, %v138_v31  ;;  %149 = vst.msk [vmem:[#allocation2 + $0x30] sm:$0xff] %vm145_vm11, %v140_v32 }
  0x7c   :  { %v239_v33 = vld [vmem:[#allocation2] sm:$0xff]  ;;  %v241_v35 = vld [vmem:[#allocation2 + $0x10] sm:$0xff] }
  0x7d   :  { %396 = vmatmul.mubr.bf16.vlgmr.msra.gmra.mrb[0].mxu0 %v239_v33 }
  0x7e   :  { %466 = vmatprep.mubr.msk.bf16.mxu0 %vm90_vm5, %v628_v57 }
  0x80   :  { %v243_v34 = vld [vmem:[#allocation2 + $0x20] sm:$0xff]  ;;  %v245_v1 = vld [vmem:[#allocation2 + $0x30] sm:$0xff] }
  0x81   :  { %412 = vmatmul.mubr.bf16.vlgmr.msra.gmra.mrb[0].mxu1 %v243_v34 }
  0x82   :  { %468 = vmatprep.mubr.msk.bf16.mxu1 %vm90_vm5, %v640_v61 }
  0x85   :  { %404 = vmatmul.mubr.bf16.gmra.mrb[4].mxu0 %v241_v35 }
  0x89   :  { %420 = vmatmul.mubr.bf16.gmra.mrb[4].mxu1 %v245_v1 }
 0x150   :  { %v397_v37 = vpop.f32.mrb[0].mxu0 }
 0x151   :  { %v398_v38 = vadd.f32 %v452_v36, %v397_v37  ;;  %v399_v39 = vpop.f32.mrb[1].mxu0 }
 0x152   :  { %v400_v40 = vpop.f32.mrb[2].mxu0 }
 0x153   :  { %428 = vst [vmem:[%s720_s3] sm:$0xff] %v398_v38  ;;  %v401_v41 = vadd.f32 %v452_v36, %v400_v40  ;;  %v402_v42 = vpop.f32.mrb[3].mxu0 }
 0x154   :  { %v413_v43 = vpop.f32.mrb[0].mxu1 }
 0x155   :  { %429 = vst [vmem:[%s720_s3 + $0x8] sm:$0xff] %v401_v41  ;;  %v414_v44 = vadd.f32 %v452_v36, %v413_v43  ;;  %v415_v45 = vpop.f32.mrb[1].mxu1 }
 0x156   :  { %v416_v46 = vpop.f32.mrb[2].mxu1 }
 0x157   :  { %432 = vst [vmem:[%s720_s3 + $0x20] sm:$0xff] %v414_v44  ;;  %v417_v47 = vadd.f32 %v452_v36, %v416_v46  ;;  %v418_v48 = vpop.f32.mrb[3].mxu1 }
 0x158   :  { %v405_v49 = vpop.f32.mrb[4].mxu0 }
 0x159   :  { %433 = vst [vmem:[%s720_s3 + $0x28] sm:$0xff] %v417_v47  ;;  %v406_v50 = vadd.f32 %v452_v36, %v405_v49  ;;  %v407_v51 = vpop.f32.mrb[5].mxu0 }
 0x15a   :  { %v408_v52 = vpop.f32.mrb[6].mxu0 }
 0x15b   :  { %430 = vst [vmem:[%s720_s3 + $0x10] sm:$0xff] %v406_v50  ;;  %v409_v53 = vadd.f32 %v452_v36, %v408_v52  ;;  %v410_v54 = vpop.f32.mrb[7].mxu0 }
 0x15c   :  { %v421_v55 = vpop.f32.mrb[4].mxu1 }
 0x15d   :  { %431 = vst [vmem:[%s720_s3 + $0x18] sm:$0xff] %v409_v53  ;;  %v422_v56 = vadd.f32 %v452_v36, %v421_v55  ;;  %v423_v57 = vpop.f32.mrb[5].mxu1 }
 0x15e   :  { %v424_v58 = vpop.f32.mrb[6].mxu1 }
 0x15f   :  { %434 = vst [vmem:[%s720_s3 + $0x30] sm:$0xff] %v422_v56  ;;  %v425_v59 = vadd.f32 %v452_v36, %v424_v58  ;;  %v426_v60 = vpop.f32.mrb[7].mxu1 }
 0x161   :  { %435 = vst [vmem:[%s720_s3 + $0x38] sm:$0xff] %v425_v59 }

</bundles_post_ra>
